<compile_context>
chip_gen: v5e
topology: v5e:2x2
jax: 0.10.0
libtpu: 0.0.40
codegen_flags: <defaults>
</compile_context>

<pallas_src>
import functools

import jax
import jax.numpy as jnp
from jax.experimental import pallas as pl
from jax.experimental.pallas import tpu as pltpu


# ---------------------------------------------------------------------------
# Pass 1: channel mean / max reduction (dominant, HBM-streaming)
# ---------------------------------------------------------------------------
def _channel_reduce_kernel(x_ref, o_ref, sum_ref, max_ref, *, C, TC):
    # x_ref  : (1, TC, THW) block of x (native dtype)
    # o_ref  : (1, 2, THW) f32 output block  [row 0 = mean, row 1 = max]
    # sum_ref/max_ref : (1, THW) f32 running accumulators (VMEM scratch)
    c = pl.program_id(2)
    x = x_ref[0]                                          # (TC, THW)

    if C % TC != 0:
        # Masked tail chunk: invalid channels contribute 0 to the sum and
        # -inf to the max (partial boundary blocks may contain garbage).
        ch = jax.lax.broadcasted_iota(jnp.int32, (TC, 1), 0)
        valid = (c * TC + ch) < C
        x_sum_in = jnp.where(valid, x, jnp.zeros((), x.dtype))
        x_max_in = jnp.where(valid, x, jnp.array(-jnp.inf, x.dtype))
    else:
        x_sum_in = x
        x_max_in = x

    # f32 accumulation without materializing a full f32 copy of the block;
    # max stays in the native dtype, only the (1, THW) result is cast.
    csum = jnp.sum(x_sum_in, axis=0, dtype=jnp.float32, keepdims=True)
    cmax = jnp.max(x_max_in, axis=0, keepdims=True).astype(jnp.float32)

    @pl.when(c == 0)
    def _():
        sum_ref[...] = jnp.zeros(sum_ref.shape, sum_ref.dtype)
        max_ref[...] = jnp.full(max_ref.shape, -jnp.inf, max_ref.dtype)

    # single unconditional accumulate (merged c==0 / c>0 paths)
    sum_ref[...] = sum_ref[...] + csum
    max_ref[...] = jnp.maximum(max_ref[...], cmax)

    @pl.when(c == pl.num_programs(2) - 1)
    def _():
        o_ref[0] = jnp.concatenate(
            [sum_ref[...] * (1.0 / C), max_ref[...]], axis=0)


# ---------------------------------------------------------------------------
# Pass 2: 2->1 KxK "same" conv on the flat planes + sigmoid (tiny)
# ---------------------------------------------------------------------------
def _conv_sigmoid_kernel(p_ref, w_ref, b_ref, o_ref, *, H, W, K, pad):
    # p_ref : (1, 2, HWp) f32  [avg, max] planes (flat, lane-dense)
    # w_ref : (2, K*K)    f32  conv weight (row 0: avg taps, row 1: max taps)
    # b_ref : (1,)        f32  conv bias (SMEM)
    # o_ref : (1, 1, HWp) output block
    planes = p_ref[0]                                     # (2, HWp)
    HWp = planes.shape[1]
    wmat = w_ref[...]                                     # (2, K*K)

    lin = jax.lax.broadcasted_iota(jnp.int32, (1, HWp), 1)
    row = lin // W
    col = lin - row * W

    acc = jnp.zeros((2, HWp), jnp.float32)
    for di in range(K):
        for dj in range(K):
            oa = di - pad                                 # tap row offset
            ob = dj - pad                                 # tap col offset
            off = oa * W + ob                             # flat offset
            sh = (-off) % HWp                             # y[n] = planes[n+off]
            rolled = pltpu.roll(planes, shift=sh, axis=1) if sh else planes
            # Zero-padding boundary mask: out-of-image taps contribute 0,
            # and (with HW padding) padded lanes are never read for valid n.
            conds = []
            if oa < 0:
                conds.append(row + oa >= 0)
            if oa > 0:
                conds.append(row + oa < H)
            if ob < 0:
                conds.append(col + ob >= 0)
            if ob > 0:
                conds.append(col + ob < W)
            if conds:
                mask = conds[0]
                for cc in conds[1:]:
                    mask = mask & cc
                rolled = jnp.where(mask, rolled, 0.0)
            t = di * K + dj
            acc = acc + rolled * wmat[:, t:t + 1]         # stacked FMA

    conv = jnp.sum(acc, axis=0, keepdims=True) + b_ref[0]  # (1, HWp)
    o_ref[0] = jax.nn.sigmoid(conv).astype(o_ref.dtype)


# ---------------------------------------------------------------------------
# VMEM budgeting / tiling
# ---------------------------------------------------------------------------
def _vmem_budget():
    """Return (per-input-block byte budget, vmem_limit_bytes), derived from
    this generation's VMEM capacity (v5e/v6e: 128 MiB -> ~24 MiB blocks /
    96 MiB limit; v7x: 64 MiB -> ~12 MiB blocks / 48 MiB limit)."""
    try:
        cap = int(pltpu.get_tpu_info().vmem_capacity_bytes)
        if cap <= 0:
            raise ValueError("bad vmem capacity")
    except Exception:
        cap = 64 * 1024 * 1024           # safe lower bound (v7x per-core VMEM)
    vmem_limit = min((cap * 3) // 4, 96 * 1024 * 1024)
    block_budget = vmem_limit // 4       # double-buffered input + headroom
    return block_budget, vmem_limit


def _choose_tiling(B, C, HWp, itemsize, block_budget):
    """Pick (TC, THW): channel chunk (multiple of 8 or == C) and spatial tile
    (multiple of 128 dividing HWp). Maximizes the block within the dtype-aware
    budget and guarantees >= 2 spatial tiles when B == 1 (megacore on v7x)."""
    min_hw_tiles = 2 if (B < 2 and HWp >= 256) else 1
    divisors = [t for t in range(128, HWp + 1, 128) if HWp % t == 0] or [HWp]
    split_ok = [t for t in divisors if HWp // t >= min_hw_tiles]
    cands = split_ok or divisors
    min_tc = min(C, 8)
    fitting = [t for t in cands if min_tc * t * itemsize <= block_budget]
    thw = max(fitting) if fitting else min(cands)
    cap_tc = max(1, block_budget // (thw * itemsize))
    if C <= cap_tc:
        tc = C                            # whole channel dim in one chunk
    else:
        tc = max(8, (cap_tc // 8) * 8)    # multiple of 8, tail chunk masked
    return tc, thw


# ---------------------------------------------------------------------------
# Wrapper
# ---------------------------------------------------------------------------
def spatial_attention(x, weight, bias, *, kernel_size=3, padding=1):
    """x: (B, C, H, W); weight: (1, 2, K, K); bias: (1,). Returns (B, 1, H, W)."""
    B, C, H, W = x.shape
    K = kernel_size
    assert 2 * padding == K - 1, "requires padding = (kernel_size - 1) // 2"
    HW = H * W
    HWp = ((HW + 127) // 128) * 128       # lane-dense flat spatial axis

    x_flat = x.reshape(B, C, HW)
    if HWp != HW:
        x_flat = jnp.pad(x_flat, ((0, 0), (0, 0), (0, HWp - HW)))

    itemsize = jnp.dtype(x.dtype).itemsize
    block_budget, vmem_limit = _vmem_budget()
    TC, THW = _choose_tiling(B, C, HWp, itemsize, block_budget)
    n_c = pl.cdiv(C, TC)
    n_hw = HWp // THW

    # ---- pass 1: channel mean / max planes (f32) ----
    planes = pl.pallas_call(
        functools.partial(_channel_reduce_kernel, C=C, TC=TC),
        out_shape=jax.ShapeDtypeStruct((B, 2, HWp), jnp.float32),
        grid=(B, n_hw, n_c),
        in_specs=[pl.BlockSpec((1, TC, THW), lambda b, h, c: (b, c, h))],
        out_specs=pl.BlockSpec((1, 2, THW), lambda b, h, c: (b, 0, h)),
        scratch_shapes=[pltpu.VMEM((1, THW), jnp.float32),   # running sum
                        pltpu.VMEM((1, THW), jnp.float32)],  # running max
        compiler_params=pltpu.CompilerParams(
            dimension_semantics=("parallel", "parallel", "arbitrary"),
            vmem_limit_bytes=vmem_limit),
    )(x_flat)

    # ---- pass 2: tiny 2->1 KxK conv + sigmoid ----
    w2 = weight.reshape(2, K * K).astype(jnp.float32)   # [cin, kh*kw]
    b1 = bias.reshape(1).astype(jnp.float32)

    out_flat = pl.pallas_call(
        functools.partial(_conv_sigmoid_kernel, H=H, W=W, K=K, pad=padding),
        out_shape=jax.ShapeDtypeStruct((B, 1, HWp), x.dtype),
        grid=(B,),
        in_specs=[pl.BlockSpec((1, 2, HWp), lambda b: (b, 0, 0)),
                  pl.BlockSpec((2, K * K), lambda b: (0, 0)),
                  pl.BlockSpec(memory_space=pltpu.MemorySpace.SMEM)],
        out_specs=pl.BlockSpec((1, 1, HWp), lambda b: (b, 0, 0)),
        compiler_params=pltpu.CompilerParams(
            dimension_semantics=("parallel",),
            vmem_limit_bytes=vmem_limit),
    )(planes, w2, b1)

    out = out_flat[:, :, :HW] if HWp != HW else out_flat
    return out.reshape(B, 1, H, W)


# ---------------------------------------------------------------------------
# Reference + self-test
# ---------------------------------------------------------------------------
def _reference(x, weight, bias, padding):
    avg = jnp.mean(x, axis=1, keepdims=True)
    mx = jnp.max(x, axis=1, keepdims=True)
    feat = jnp.concatenate([avg, mx], axis=1)
    out = jax.lax.conv_general_dilated(
        feat, weight, window_strides=(1, 1),
        padding=((padding, padding), (padding, padding)),
        dimension_numbers=("NCHW", "OIHW", "NCHW"))
    out = out + bias.reshape(1, 1, 1, 1)
    return jax.nn.sigmoid(out)


if __name__ == "__main__":
    B, C, H, W = 2, 4, 16, 16
    K, P = 3, 1   # chosen Conv2d kwargs: kernel_size=3, padding=1 (CBAM default)

    key = jax.random.PRNGKey(0)
    kx, kw, kb = jax.random.split(key, 3)
    x = jax.random.normal(kx, (B, C, H, W), dtype=jnp.float32)
    # Deterministic synthetic parameters (shapes from nn.Conv2d(2, 1, K)).
    weight = jax.random.normal(kw, (1, 2, K, K), dtype=jnp.float32) * 0.1
    bias = jax.random.normal(kb, (1,), dtype=jnp.float32) * 0.1

    out = spatial_attention(x, weight, bias, kernel_size=K, padding=P)
    out = jax.block_until_ready(out)

    ref = _reference(x, weight, bias, P)
    assert out.shape == (B, 1, H, W), out.shape
    assert jnp.allclose(out, ref, atol=1e-5, rtol=1e-5), float(
        jnp.max(jnp.abs(out - ref)))

    print("KERNEL_OK")
</pallas_src>

<mosaic_0001>
module attributes {stable_mosaic.version = 11 : i64} {
  func.func @_channel_reduce_kernel(%arg0: i32, %arg1: i32, %arg2: i32, %arg3: memref<1x4x256xf32, #tpu.memory_space<vmem>>, %arg4: memref<1x2x256xf32, #tpu.memory_space<vmem>>, %arg5: memref<1x256xf32, #tpu.memory_space<vmem>>, %arg6: memref<1x256xf32, #tpu.memory_space<vmem>>) attributes {dimension_semantics = [#tpu.dimension_semantics<parallel>, #tpu.dimension_semantics<parallel>, #tpu.dimension_semantics<arbitrary>], iteration_bounds = array<i64: 2, 1, 1>, scalar_prefetch = 0 : i64, scratch_operands = 2 : i64, tpu.core_type = #tpu.core_type<tc>, window_params = [{transform_indices = @transform_0, window_bounds = array<i64: 1, 4, 256>}, {transform_indices = @transform_1, window_bounds = array<i64: 1, 2, 256>}]} {
    %c0 = arith.constant 0 : index
    %c0_0 = arith.constant 0 : index
    %c0_1 = arith.constant 0 : index
    %0 = vector.load %arg3[%c0, %c0_0, %c0_1] : memref<1x4x256xf32, #tpu.memory_space<vmem>>, vector<1x4x256xf32>
    %1 = vector.shape_cast %0 : vector<1x4x256xf32> to vector<4x256xf32>
    %cst = arith.constant dense<0.000000e+00> : vector<256xf32>
    %2 = vector.multi_reduction <add>, %1, %cst [0] : vector<4x256xf32> to vector<256xf32>
    %3 = vector.shape_cast %2 : vector<256xf32> to vector<1x256xf32>
    %cst_2 = arith.constant dense<0xFF800000> : vector<256xf32>
    %4 = vector.multi_reduction <maximumf>, %1, %cst_2 [0] : vector<4x256xf32> to vector<256xf32>
    %5 = vector.shape_cast %4 : vector<256xf32> to vector<1x256xf32>
    %c0_i32 = arith.constant 0 : i32
    %6 = arith.cmpi eq, %arg2, %c0_i32 : i32
    %7 = arith.extui %6 : i1 to i32
    %c0_i32_3 = arith.constant 0 : i32
    %8 = arith.cmpi ne, %7, %c0_i32_3 : i32
    scf.if %8 {
      %cst_14 = arith.constant 0.000000e+00 : f32
      %18 = vector.broadcast %cst_14 : f32 to vector<1x256xf32>
      %c0_15 = arith.constant 0 : index
      %c0_16 = arith.constant 0 : index
      %19 = vector.load %arg5[%c0_15, %c0_16] : memref<1x256xf32, #tpu.memory_space<vmem>>, vector<1x256xf32>
      tpu.vector_store %arg5[%c0_15, %c0_16], %18 {strides = array<i32>} : memref<1x256xf32, #tpu.memory_space<vmem>>, vector<1x256xf32>,
      %cst_17 = arith.constant 0xFF800000 : f32
      %20 = vector.broadcast %cst_17 : f32 to vector<1x256xf32>
      %c0_18 = arith.constant 0 : index
      %c0_19 = arith.constant 0 : index
      %21 = vector.load %arg6[%c0_18, %c0_19] : memref<1x256xf32, #tpu.memory_space<vmem>>, vector<1x256xf32>
      tpu.vector_store %arg6[%c0_18, %c0_19], %20 {strides = array<i32>} : memref<1x256xf32, #tpu.memory_space<vmem>>, vector<1x256xf32>,
    } else {
    }
    %c0_4 = arith.constant 0 : index
    %c0_5 = arith.constant 0 : index
    %9 = vector.load %arg5[%c0_4, %c0_5] : memref<1x256xf32, #tpu.memory_space<vmem>>, vector<1x256xf32>
    %10 = arith.addf %9, %3 : vector<1x256xf32>
    %c0_6 = arith.constant 0 : index
    %c0_7 = arith.constant 0 : index
    %11 = vector.load %arg5[%c0_6, %c0_7] : memref<1x256xf32, #tpu.memory_space<vmem>>, vector<1x256xf32>
    tpu.vector_store %arg5[%c0_6, %c0_7], %10 {strides = array<i32>} : memref<1x256xf32, #tpu.memory_space<vmem>>, vector<1x256xf32>,
    %c0_8 = arith.constant 0 : index
    %c0_9 = arith.constant 0 : index
    %12 = vector.load %arg6[%c0_8, %c0_9] : memref<1x256xf32, #tpu.memory_space<vmem>>, vector<1x256xf32>
    %13 = arith.maximumf %12, %5 : vector<1x256xf32>
    %c0_10 = arith.constant 0 : index
    %c0_11 = arith.constant 0 : index
    %14 = vector.load %arg6[%c0_10, %c0_11] : memref<1x256xf32, #tpu.memory_space<vmem>>, vector<1x256xf32>
    tpu.vector_store %arg6[%c0_10, %c0_11], %13 {strides = array<i32>} : memref<1x256xf32, #tpu.memory_space<vmem>>, vector<1x256xf32>,
    %c0_i32_12 = arith.constant 0 : i32
    %15 = arith.cmpi eq, %arg2, %c0_i32_12 : i32
    %16 = arith.extui %15 : i1 to i32
    %c0_i32_13 = arith.constant 0 : i32
    %17 = arith.cmpi ne, %16, %c0_i32_13 : i32
    scf.if %17 {
      %c0_14 = arith.constant 0 : index
      %c0_15 = arith.constant 0 : index
      %18 = vector.load %arg5[%c0_14, %c0_15] : memref<1x256xf32, #tpu.memory_space<vmem>>, vector<1x256xf32>
      %cst_16 = arith.constant 2.500000e-01 : f32
      %19 = vector.broadcast %cst_16 : f32 to vector<1x256xf32>
      %20 = arith.mulf %18, %19 : vector<1x256xf32>
      %c0_17 = arith.constant 0 : index
      %c0_18 = arith.constant 0 : index
      %21 = vector.load %arg6[%c0_17, %c0_18] : memref<1x256xf32, #tpu.memory_space<vmem>>, vector<1x256xf32>
      %22 = tpu.concatenate %20, %21 in 0 : vector<1x256xf32>, vector<1x256xf32> -> vector<2x256xf32>
      %c0_19 = arith.constant 0 : index
      %c0_20 = arith.constant 0 : index
      %c0_21 = arith.constant 0 : index
      %23 = vector.load %arg4[%c0_19, %c0_20, %c0_21] : memref<1x2x256xf32, #tpu.memory_space<vmem>>, vector<1x2x256xf32>
      %24 = vector.shape_cast %23 : vector<1x2x256xf32> to vector<2x256xf32>
      %25 = vector.shape_cast %22 : vector<2x256xf32> to vector<1x2x256xf32>
      tpu.vector_store %arg4[%c0_19, %c0_20, %c0_21], %25 {strides = array<i32>} : memref<1x2x256xf32, #tpu.memory_space<vmem>>, vector<1x2x256xf32>,
    } else {
    }
    return
  }
  func.func @transform_0(%arg0: i32, %arg1: i32, %arg2: i32) -> (i32, i32, i32) {
    %c0_i32 = arith.constant 0 : i32
    return %arg0, %arg2, %arg1 : i32, i32, i32
  }
  func.func @transform_1(%arg0: i32, %arg1: i32, %arg2: i32) -> (i32, i32, i32) {
    %c0_i32 = arith.constant 0 : i32
    %c0_i32_0 = arith.constant 0 : i32
    return %arg0, %c0_i32, %arg1 : i32, i32, i32
  }
}

</mosaic_0001>

<bundles_post_ra>
// kernel: tpu_custom_call.1
= control target key start
LH: loop header
LB: loop body
LE: loop exit
PB: predicated region body
PF: predicated region fallthrough
CT: control target
= control target key end

     0   :  { %6 = vsyncpa [#allocation5], 0  ;;  %s719_s0 = inlined_call_operand.hbm [shape: f32[2,4,256], index: 0, kind: input, shape index: {}]   ;;  %s720_s1 = inlined_call_operand.hbm [shape: f32[2,2,256], index: 1, kind: output, shape index: {}]  }
   0x1   :  { %8 = vsyncpa [#allocation5 + $0x1], 0 }
   0x2   :  { %9 = vsyncpa [#allocation6], 0 }
   0x3   :  { %11 = vsyncpa [#allocation6 + $0x1], 0  ;;  %s578_s6 = smov 0   ;;  %s580_s7 = smov 0  }
   0x4   :  { %s582_s8 = smov 0   ;;  %s584_s9 = smov 0  }
   0x5   :  { %s586_s10 = smov 0   ;;  %s588_s11 = smov 0  }
   0x6 LB: > { %s371_s12 = sadd.s32 4294967295, %s564_s11   ;;  %s372_s13 = sadd.s32 4294967294, %s564_s11   ;;  %s564_s11 = sphi %s588_s11, %s17_s11   ;;  %s560_s10 = sphi %s586_s10, %s731_s10   ;;  %s556_s9 = sphi %s584_s9, %s730_s9   ;;  %s552_s8 = sphi %s582_s8, %s729_s8   ;;  %s548_s7 = sphi %s580_s7, %s728_s7   ;;  %s544_s6 = sphi %s578_s6, %s727_s6  }
   0x7   : > { %s36_s14 = sadd.s32 1, %s560_s10  ;;  %s47_s15 = sadd.s32 1, %s552_s8 }
   0x8   : > { %p38_p0 = scmp.ge.s32.totalorder %s36_s14, 2  ;;  %p54_p1 = scmp.ne.s32.totalorder %s552_s8, %s548_s7 }
   0x9   : > { %p55_p2 = scmp.eq.s32.totalorder %s564_s11, 0  ;;  %p60_p3 = scmp.ne.s32.totalorder %s548_s7, %s544_s6 }
   0xa   : > { %s733_s14 = smov (%p38_p0, %s36_s14), 0  ;;  %p61_p5 = scmp.eq.s32.totalorder %s371_s12, 0 }
   0xb   : > { %p619_p4 = por %p55_p2, %p54_p1  ;;  %s40_s17 = ssub.s32 %s560_s10, %s733_s14 }
   0xc   : > { %p86_p6 = scmp.eq.s32.totalorder %s371_s12, 1  ;;  %p45_p7 = scmp.eq.s32.totalorder %s40_s17, 0 }
   0xd   : > { %p625_p8 = por %p61_p5, %p60_p3  ;;  %p92_p10 = scmp.eq.s32.totalorder %s372_s13, 1 }
   0xe   : > { %p629_p9 = por %p86_p6, %p54_p1  ;;  %p374_p12 = scmp.ge.s32.totalorder %s564_s11, 2 }
   0xf   : > { %s634_s20 = scalar_select %p45_p7, %s552_s8, %s47_s15  }
  0x10   : > { %p636_p11 = por %p92_p10, %p60_p3  ;;  %p400_p13 = scmp.lt.s32.totalorder %s564_s11, 2 }
  0x11   : > { %s112_s22 = sand.u32 1, %s552_s8   ;;  %s386_s24 = sshll.u32 %s560_s10, 3 }
  0x12   : > { %s375_s23 = sshll.u32 %s112_s22, 3  ;;  %s125_s27 = scalar_lea.hbm %s719_s0, %s386_s24 }
  0x13   : > { %s116_s28 = scalar_lea.vmem [#allocation4], %s375_s23  ;;  %s127_s30 = sshll.u32 %s125_s27, 4  ;;  %s128_s30 = int_to_ptr.hbm [resolvable:$true] %s127_s30 }
  0x14   : > { %s129_s29 = sshll.u32 %s116_s28, 4  ;;  %p393_p0 = pnand %p400_p13, %p619_p4  ;;  %s130_s29 = int_to_ptr.vmem [resolvable:$true] %s129_s29 }
  0x15   : > { %p378_p1 = scmp.ge.s32.totalorder %s564_s11, 1  ;;  %p134_p2 = scmp.lt.s32.totalorder %s564_s11, 3 }
  0x16   : > { %s113_s2 = scalar_lea.sflag [#allocation5], %s112_s22 }
  0x17   : > { %395 = dma.hbm_to_vmem [thread:$0]  (!%p393_p0), %s128_s30, 128, %s130_s29, %s113_s2  }
  0x18   : > { %p135_p3 = pnand %p378_p1, %p134_p2 }
  0x19   : > { %s652_s3 = sand.u32 (!%p135_p3), 1, %s548_s7  }
  0x1a   : > { %138 = sbr.rel (%p135_p3) target bundleno = 84 (0x54), region = 24  ;;  %s379_s4 = sshll.u32 (!%p135_p3), %s652_s3, 3 }
  0x1b   : > { %s141_s5 = scalar_lea.sflag (!%p135_p3), [#allocation5], %s652_s3  ;;  %s144_s12 = scalar_lea.vmem (!%p135_p3), [#allocation4], %s379_s4 }
  0x1f   : > { %535 = dma.done.wait (%p625_p8), %s141_s5, 128  }
  0x20   : > { %537 = vsyncadd (%p625_p8), %s141_s5, 4294967168  ;;  %v211_v0 = vlaneseq  ;;  %v566_v2 = vmov 0.0   ;;  %v567_v3 = vmov -inf   ;;  %v166_v4 = vld [vmem:[%s144_s12] sm:$0xff]  ;;  %vm173_vm1 = vcmask 1043456   ;;  %s380_s13 = sshll.u32 %s652_s3, 2 }
  0x21   : > { %168 = vst [vmem:[#allocation1] ss:$2 sm:$0xff] %v166_v4  ;;  %vm221_vm2 = vcmask 1040384   ;;  %s387_s15 = sshll.u32 %s556_s9, 2  ;;  %s163_s22 = scalar_lea.vmem [#allocation7], %s380_s13  ;;  %vm259_vm3 = vcmask 1041408  }
  0x22   : > { %vm660_vm0 = vcmp.lt.s32.totalorder %v211_v0, 256  ;;  %s277_s18 = scalar_lea.hbm %s720_s1, %s387_s15  ;;  %s279_s23 = sshll.u32 %s163_s22, 4  ;;  %s280_s23 = int_to_ptr.vmem [resolvable:$true] %s279_s23 }
  0x23   : > { %215 = vst.msk [vmem:[#allocation2] sm:$0x3] %vm660_vm0, %v566_v2  ;;  %s281_s24 = sshll.u32 %s277_s18, 4  ;;  %s264_s9 = scalar_lea.sflag [#allocation6], %s652_s3  ;;  %s282_s24 = int_to_ptr.hbm [resolvable:$true] %s281_s24 }
  0x24   : > { %216 = vst.msk [vmem:[#allocation3] sm:$0x3] %vm660_vm0, %v567_v3  ;;  %s496_s25 = sshra.s32 %s282_s24, 4  ;;  %s502_s29 = scalar_lea.hbm %s720_s1, 8  ;;  %s497_s25 = int_to_ptr.hbm [resolvable:$true] %s496_s25 }
  0x25   : > { %s498_s26 = scalar_lea.hbm %s497_s25, 4  ;;  %p503_p7 = scmp.lt.s32.totalorder %s497_s25, %s720_s1 }
  0x26   : > { %p499_p4 = scmp.ne.s32.totalorder %s497_s25, %s498_s26  ;;  %p504_p8 = scmp.lt.s32.totalorder %s502_s29, %s498_s26 }
  0x28   : > { %v169_v5 = vld.sshfl [vmem:[#allocation1] sm:$0xff pattern:$0x75316420]  ;;  %v170_v6 = vld.sshfl [vmem:[#allocation1 + $0x8] sm:$0xff pattern:$0x75316420]  ;;  %p500_p5 = pnand %p499_p4, %p629_p9  ;;  %p505_p10 = por %p504_p8, %p503_p7 }
  0x29   : > { %v174_v7 = vsel %vm173_vm1, %v169_v5, 0.0  ;;  %v181_v8 = vsel %vm173_vm1, %v170_v6, 0.0  ;;  %188 = vst [vmem:[#allocation1] ss:$2 sm:$0xff] %v166_v4 }
  0x2a   : > { %v175_v9 = vrot.slane %v174_v7, 4  ;;  %v182_v10 = vrot.slane %v181_v8, 4  ;;  %v217_v29 = vld [vmem:[#allocation2] sm:$0x3]  ;;  %p501_p6 = pneg %p500_p5 }
  0x2b   : > { %v230_v41 = vld [vmem:[#allocation3] sm:$0x3] }
  0x2c   : > { %v176_v11 = vadd.f32 %v175_v9, %v174_v7  ;;  %v183_v12 = vadd.f32 %v182_v10, %v181_v8  ;;  %p506_p13 = pnand %p505_p10, %p501_p6 }
  0x2e   : > { %v177_v13 = vrot.slane %v176_v11, 2  ;;  %v184_v14 = vrot.slane %v183_v12, 2 }
  0x30   : > { %v178_v15 = vadd.f32 %v177_v13, %v176_v11  ;;  %v185_v16 = vadd.f32 %v184_v14, %v183_v12  ;;  %v189_v17 = vld.sshfl [vmem:[#allocation1] sm:$0xff pattern:$0x75316420]  ;;  %v190_v18 = vld.sshfl [vmem:[#allocation1 + $0x8] sm:$0xff pattern:$0x75316420] }
  0x31   : > { %v193_v19 = vsel %vm173_vm1, %v189_v17, -inf  ;;  %v200_v20 = vsel %vm173_vm1, %v190_v18, -inf }
  0x32   : > { %v179_v21 = vrot.slane %v178_v15, 1  ;;  %v186_v22 = vrot.slane %v185_v16, 1  ;;  %v194_v23 = vrot.slane %v193_v19, 4  ;;  %v201_v24 = vrot.slane %v200_v20, 4 }
  0x34   : > { %v187_v25 = vadd.f32 %v186_v22, %v185_v16  ;;  %v195_v26 = vmax.f32 %v193_v19, %v194_v23  ;;  %v202_v27 = vmax.f32 %v200_v20, %v201_v24  ;;  %v180_v28 = vadd.f32 %v179_v21, %v178_v15 }
  0x36   : > { %v220_v30 = vrot.slane %v187_v25, 7  ;;  %v196_v31 = vrot.slane %v195_v26, 2  ;;  %v203_v32 = vrot.slane %v202_v27, 2 }
  0x38   : > { %v222_v33 = vsel %vm221_vm2, %v180_v28, %v220_v30  ;;  %v197_v34 = vmax.f32 %v195_v26, %v196_v31  ;;  %v204_v35 = vmax.f32 %v202_v27, %v203_v32 }
  0x39   : > { %v224_v36 = vadd.f32 %v222_v33, %v217_v29 }
  0x3a   : > { %v198_v37 = vrot.slane %v197_v34, 1  ;;  %v205_v38 = vrot.slane %v204_v35, 1 }
  0x3b   : > { %229 = vst.msk [vmem:[#allocation2] sm:$0x3] %vm660_vm0, %v224_v36 }
  0x3c   : > { %v206_v39 = vmax.f32 %v204_v35, %v205_v38  ;;  %v199_v40 = vmax.f32 %v197_v34, %v198_v37 }
  0x3e   : > { %v233_v42 = vrot.slane %v206_v39, 7 }
  0x40   : > { %v234_v43 = vsel %vm221_vm2, %v199_v40, %v233_v42 }
  0x41   : > { %v236_v44 = vmax.f32 %v230_v41, %v234_v43 }
  0x42   : > { %v241_v45 = vld [vmem:[#allocation2] sm:$0x3] }
  0x43   : > { %237 = vst.msk [vmem:[#allocation3] sm:$0x3] %vm660_vm0, %v236_v44  ;;  %v242_v46 = vmul.f32 0.25, %v241_v45 }
  0x45   : > { %v246_v48 = vperm.slane %v242_v46, 1  ;;  %v245_v51 = vperm.slane %v242_v46, 0 }
  0x4a   : > { %v243_v47 = vld [vmem:[#allocation3] sm:$0x3] }
  0x4b   : > { %v250_v49 = vperm.slane %v243_v47, 0  ;;  %v251_v50 = vperm.slane %v243_v47, 1 }
  0x4d   : > { %v255_v52 = vsel %vm221_vm2, %v246_v48, %v251_v50  ;;  %v254_v54 = vsel %vm221_vm2, %v245_v51, %v250_v49 }
  0x4e   : > { %v258_v53 = vrot.slane %v255_v52, 6 }
  0x50   : > { %v260_v55 = vsel %vm259_vm3, %v254_v54, %v258_v53 }
  0x51   : > { %262 = vst [vmem:[%s163_s22] sm:$0xf] %v260_v55 }
  0x52   : > { %509 = shalt.err (!%p506_p13)
}
  0x53   : > { %390 = dma.vmem_to_hbm [thread:$0]  (%p629_p9), %s280_s23, 64, %s282_s24, %s264_s9  }
  0x54 PF: > { %s293_s3 = sand.u32 1, %s544_s6   ;;  %p397_p0 = pnand %p374_p12, %p636_p11 }
  0x55   : > { %s294_s4 = scalar_lea.sflag [#allocation6], %s293_s3 }
  0x56   : > { %p398_p1 = pneg %p397_p0 }
  0x58   : > { %539 = dma.done.wait (%p398_p1), %s294_s4, 64  }
  0x59   : > { %541 = vsyncadd (%p398_p1), %s294_s4, 4294967232  ;;  %s17_s11 = sadd.s32 1, %s564_s11   ;;  %s727_s6 = smov %s548_s7 }
  0x5a   : > { %p14_p2 = scmp.ge.s32.totalorder %s17_s11, 4   ;;  %s728_s7 = smov %s552_s8 }
  0x5b   : > { %s729_s8 = smov %s634_s20  ;;  %s730_s9 = smov %s560_s10 }
  0x5c   : > { %s731_s10 = smov %s733_s14  ;;  %16 = sbr.rel (!%p14_p2) target bundleno = 6 (0x6), region = 77 }
  0x61   :  { %300 = vsyncpa [#allocation5], 1 }
  0x62   :  { %302 = vsyncpa [#allocation5 + $0x1], 1 }
  0x63   :  { %303 = vsyncpa [#allocation6], 1 }
  0x64   :  { %305 = vsyncpa [#allocation6 + $0x1], 1 }

</bundles_post_ra>
